<compile_context>
chip_gen: v7x
topology: tpu7x:2x2x1
jax: 0.10.0
libtpu: 0.0.40
codegen_flags: <defaults>
</compile_context>

<pallas_src>
import math

import jax
import jax.numpy as jnp
from jax import lax
from jax.experimental import pallas as pl
from jax.experimental.pallas import tpu as pltpu


def _round_up(x, m):
    return (x + m - 1) // m * m


def _reduction_fc_kernel(x_ref, wc_ref, shift_ref, wf_ref, reduce_ref, fc_ref):
    # x_ref:      (TB, Cin)        batch tile of the flattened input
    # wc_ref:     (Cout_p, Cin)    1x1 conv weight with BN scale folded in
    # shift_ref:  (1, Cout_p)      beta - running_mean * scale
    # wf_ref:     (NC_p, Cout_p)   fc weight (original orientation)
    x = x_ref[...]
    # 1x1 conv (+ folded BN scale): contract Cin of x with Cin of wc.  The MXU
    # consumes the transposed-RHS orientation directly; no wrapper transpose.
    y = lax.dot_general(x, wc_ref[...],
                        dimension_numbers=(((1,), (1,)), ((), ())),
                        preferred_element_type=jnp.float32)
    # BN shift + ReLU: single fused elementwise add + max on the VPU.
    z = jnp.maximum(y + shift_ref[...], 0.0)
    z_out = z.astype(reduce_ref.dtype)
    reduce_ref[...] = z_out
    # fc head from the rounded activation (bf16-native MXU when x is bf16,
    # and fc stays consistent with the returned `reduce`); f32 accumulate.
    fc_ref[...] = lax.dot_general(z_out, wf_ref[...],
                                  dimension_numbers=(((1,), (1,)), ((), ())),
                                  preferred_element_type=jnp.float32
                                  ).astype(fc_ref.dtype)


def prepare_params(conv_w, bn_gamma, bn_beta, bn_mean, bn_var, fc_w, *,
                   eps=1e-5):
    """One-time weight preparation (keep this outside the per-call hot path).

    Folds the BatchNorm scale into the conv weight, keeps the original
    (Cout, Cin) / (NC, Cout) orientations (no transposes), and zero-pads the
    lane dims (Cout, NC) up to multiples of 128 so outputs are lane-dense.
    """
    cout, cin = conv_w.shape[0], conv_w.shape[1]
    nc = fc_w.shape[0]
    scale = bn_gamma / jnp.sqrt(bn_var + eps)                 # (Cout,)
    shift = bn_beta - bn_mean * scale                         # (Cout,)
    wc = conv_w.reshape(cout, cin) * scale[:, None]           # fold BN scale

    cout_p = _round_up(cout, 128)
    nc_p = _round_up(nc, 128)
    wc_p = jnp.zeros((cout_p, cin), wc.dtype).at[:cout, :].set(wc)
    shift_p = jnp.zeros((1, cout_p), shift.dtype).at[0, :cout].set(shift)
    wf_p = jnp.zeros((nc_p, cout_p), fc_w.dtype).at[:nc, :cout].set(fc_w)
    return wc_p, shift_p, wf_p, cout, nc


def reduction_fc_forward(x_nchw, prepared, *, batch_tile=256):
    """Pallas forward of ReductionFc.

    x_nchw   : (B, feat_in, 1, 1) NCHW, matching the PyTorch module.
    prepared : output of prepare_params().
    Returns (reduce, fc) = ((B, feat_out), (B, num_classes)).
    """
    wc_p, shift_p, wf_p, cout, nc = prepared
    B, cin, H, W = x_nchw.shape
    assert H == 1 and W == 1, "ReductionFc requires 1x1 spatial input"
    assert wc_p.shape[1] == cin
    cout_p = wc_p.shape[0]
    nc_p = wf_p.shape[0]

    x = x_nchw.reshape(B, cin)

    # Batch tiling: pad B to the sublane granule (8), tile at <= batch_tile.
    b_pad = _round_up(B, 8)
    tb = min(_round_up(batch_tile, 8), b_pad)
    b_pad = _round_up(b_pad, tb)
    if b_pad != B:
        x = jnp.zeros((b_pad, cin), x.dtype).at[:B].set(x)
    nb = b_pad // tb

    dtype = x.dtype
    itemsize = jnp.dtype(dtype).itemsize

    # VMEM budget: double-buffered x/out tiles + resident weights (+ slack).
    # Cap at 64 MiB so the same config is valid on v7x's smaller VMEM.
    vmem_est = 2 * (
        tb * cin * itemsize
        + tb * cout_p * itemsize
        + tb * nc_p * itemsize
        + wc_p.size * jnp.dtype(wc_p.dtype).itemsize
        + shift_p.size * jnp.dtype(shift_p.dtype).itemsize
        + wf_p.size * jnp.dtype(wf_p.dtype).itemsize
    ) + (4 << 20)
    vmem_limit = int(min(64 << 20, max(32 << 20, vmem_est)))

    flops = 2 * b_pad * cin * cout_p + 2 * b_pad * cout_p * nc_p
    bytes_accessed = (
        x.size * itemsize
        + wc_p.size * jnp.dtype(wc_p.dtype).itemsize
        + shift_p.size * jnp.dtype(shift_p.dtype).itemsize
        + wf_p.size * jnp.dtype(wf_p.dtype).itemsize
        + b_pad * cout_p * itemsize
        + b_pad * nc_p * itemsize
    )

    reduce_p, fc_p = pl.pallas_call(
        _reduction_fc_kernel,
        out_shape=(jax.ShapeDtypeStruct((b_pad, cout_p), dtype),
                   jax.ShapeDtypeStruct((b_pad, nc_p), dtype)),
        grid=(nb,),
        in_specs=[
            pl.BlockSpec((tb, cin), lambda i: (i, 0)),       # x: tiled over B
            pl.BlockSpec((cout_p, cin), lambda i: (0, 0)),   # weights stay
            pl.BlockSpec((1, cout_p), lambda i: (0, 0)),     # VMEM-resident
            pl.BlockSpec((nc_p, cout_p), lambda i: (0, 0)),
        ],
        out_specs=(
            pl.BlockSpec((tb, cout_p), lambda i: (i, 0)),
            pl.BlockSpec((tb, nc_p), lambda i: (i, 0)),
        ),
        compiler_params=pltpu.CompilerParams(
            dimension_semantics=("parallel",),
            vmem_limit_bytes=vmem_limit),
        cost_estimate=pl.CostEstimate(flops=flops, transcendentals=0,
                                      bytes_accessed=bytes_accessed),
    )(x, wc_p, shift_p, wf_p)

    return reduce_p[:B, :cout], fc_p[:B, :nc]


def init_params(key, feat_in, feat_out, num_classes):
    """Deterministic init matching the module's __init__."""
    k_conv, k_gamma, k_fc = jax.random.split(key, 3)
    # kaiming_normal_(mode='fan_in') on conv weight: std = sqrt(2 / feat_in)
    conv_w = jax.random.normal(k_conv, (feat_out, feat_in, 1, 1),
                               jnp.float32) * math.sqrt(2.0 / feat_in)
    # BN: weight ~ N(1, 0.02), bias = 0, running_mean = 0, running_var = 1
    bn_gamma = 1.0 + 0.02 * jax.random.normal(k_gamma, (feat_out,), jnp.float32)
    bn_beta = jnp.zeros((feat_out,), jnp.float32)
    bn_mean = jnp.zeros((feat_out,), jnp.float32)
    bn_var = jnp.ones((feat_out,), jnp.float32)
    # kaiming_normal_(mode='fan_out') on fc weight (num_classes, feat_out):
    # fan_out = num_classes, std = sqrt(2 / num_classes)
    fc_w = jax.random.normal(k_fc, (num_classes, feat_out),
                             jnp.float32) * math.sqrt(2.0 / num_classes)
    return conv_w, bn_gamma, bn_beta, bn_mean, bn_var, fc_w


def reference_forward(x_nchw, conv_w, bn_gamma, bn_beta, bn_mean, bn_var,
                      fc_w, *, eps=1e-5):
    B, cin, _, _ = x_nchw.shape
    cout = conv_w.shape[0]
    x = x_nchw.reshape(B, cin)
    y = x @ conv_w.reshape(cout, cin).T
    y = (y - bn_mean) / jnp.sqrt(bn_var + eps) * bn_gamma + bn_beta
    reduce = jnp.maximum(y, 0.0)
    fc = reduce @ fc_w.T
    return reduce, fc


if __name__ == "__main__":
    B, feat_in, feat_out, num_classes = 8, 64, 32, 16
    key = jax.random.PRNGKey(0)
    k_x, k_p = jax.random.split(key)
    x = jax.random.normal(k_x, (B, feat_in, 1, 1), jnp.float32)
    params = init_params(k_p, feat_in, feat_out, num_classes)

    prepared = prepare_params(*params)
    reduce_out, fc_out = reduction_fc_forward(x, prepared)
    jax.block_until_ready((reduce_out, fc_out))

    ref_reduce, ref_fc = reference_forward(x, *params)
    assert reduce_out.shape == (B, feat_out)
    assert fc_out.shape == (B, num_classes)
    assert jnp.allclose(reduce_out, ref_reduce, atol=1e-4, rtol=1e-4)
    assert jnp.allclose(fc_out, ref_fc, atol=1e-4, rtol=1e-4)
    print("KERNEL_OK")
</pallas_src>

<mosaic_0001>
module attributes {stable_mosaic.version = 11 : i64} {
  func.func @_reduction_fc_kernel(%arg0: i32, %arg1: memref<8x64xf32, #tpu.memory_space<vmem>>, %arg2: memref<128x64xf32, #tpu.memory_space<vmem>>, %arg3: memref<1x128xf32, #tpu.memory_space<vmem>>, %arg4: memref<128x128xf32, #tpu.memory_space<vmem>>, %arg5: memref<8x128xf32, #tpu.memory_space<vmem>>, %arg6: memref<8x128xf32, #tpu.memory_space<vmem>>) attributes {dimension_semantics = [#tpu.dimension_semantics<parallel>], iteration_bounds = array<i64: 1>, scalar_prefetch = 0 : i64, scratch_operands = 0 : i64, tpu.core_type = #tpu.core_type<tc>, window_params = [{transform_indices = @transform_0, window_bounds = array<i64: 8, 64>}, {pipeline_mode = #tpu.pipeline_mode<synchronous>, transform_indices = @transform_1, window_bounds = array<i64: 128, 64>}, {pipeline_mode = #tpu.pipeline_mode<synchronous>, transform_indices = @transform_2, window_bounds = array<i64: 1, 128>}, {pipeline_mode = #tpu.pipeline_mode<synchronous>, transform_indices = @transform_3, window_bounds = array<i64: 128, 128>}, {transform_indices = @transform_4, window_bounds = array<i64: 8, 128>}, {transform_indices = @transform_5, window_bounds = array<i64: 8, 128>}]} {
    %c0 = arith.constant 0 : index
    %c0_0 = arith.constant 0 : index
    %0 = vector.load %arg1[%c0, %c0_0] : memref<8x64xf32, #tpu.memory_space<vmem>>, vector<8x64xf32>
    %c0_1 = arith.constant 0 : index
    %c0_2 = arith.constant 0 : index
    %1 = vector.load %arg2[%c0_1, %c0_2] : memref<128x64xf32, #tpu.memory_space<vmem>>, vector<128x64xf32>
    %cst = arith.constant dense<0.000000e+00> : vector<8x128xf32>
    %2 = tpu.matmul %0, %1, %cst {dimension_numbers = #tpu.dot_dimension_numbers<[1], [1], [0], [0], [0, 0, 1, 0], [], []>} : vector<8x64xf32>, vector<128x64xf32>, vector<8x128xf32> -> vector<8x128xf32>
    %c0_3 = arith.constant 0 : index
    %c0_4 = arith.constant 0 : index
    %3 = vector.load %arg3[%c0_3, %c0_4] : memref<1x128xf32, #tpu.memory_space<vmem>>, vector<1x128xf32>
    %4 = vector.broadcast %3 : vector<1x128xf32> to vector<8x128xf32>
    %5 = arith.addf %2, %4 : vector<8x128xf32>
    %cst_5 = arith.constant 0.000000e+00 : f32
    %6 = vector.broadcast %cst_5 : f32 to vector<8x128xf32>
    %7 = arith.maximumf %5, %6 : vector<8x128xf32>
    %c0_6 = arith.constant 0 : index
    %c0_7 = arith.constant 0 : index
    %8 = vector.load %arg5[%c0_6, %c0_7] : memref<8x128xf32, #tpu.memory_space<vmem>>, vector<8x128xf32>
    tpu.vector_store %arg5[%c0_6, %c0_7], %7 {strides = array<i32>} : memref<8x128xf32, #tpu.memory_space<vmem>>, vector<8x128xf32>,
    %c0_8 = arith.constant 0 : index
    %c0_9 = arith.constant 0 : index
    %9 = vector.load %arg4[%c0_8, %c0_9] : memref<128x128xf32, #tpu.memory_space<vmem>>, vector<128x128xf32>
    %cst_10 = arith.constant dense<0.000000e+00> : vector<8x128xf32>
    %10 = tpu.matmul %7, %9, %cst_10 {dimension_numbers = #tpu.dot_dimension_numbers<[1], [1], [0], [0], [0, 0, 1, 0], [], []>} : vector<8x128xf32>, vector<128x128xf32>, vector<8x128xf32> -> vector<8x128xf32>
    %c0_11 = arith.constant 0 : index
    %c0_12 = arith.constant 0 : index
    %11 = vector.load %arg6[%c0_11, %c0_12] : memref<8x128xf32, #tpu.memory_space<vmem>>, vector<8x128xf32>
    tpu.vector_store %arg6[%c0_11, %c0_12], %10 {strides = array<i32>} : memref<8x128xf32, #tpu.memory_space<vmem>>, vector<8x128xf32>,
    return
  }
  func.func @transform_0(%arg0: i32) -> (i32, i32) {
    %c0_i32 = arith.constant 0 : i32
    %c0_i32_0 = arith.constant 0 : i32
    return %arg0, %c0_i32 : i32, i32
  }
  func.func @transform_1(%arg0: i32) -> (i32, i32) {
    %c0_i32 = arith.constant 0 : i32
    %c0_i32_0 = arith.constant 0 : i32
    %c0_i32_1 = arith.constant 0 : i32
    return %c0_i32, %c0_i32_0 : i32, i32
  }
  func.func @transform_2(%arg0: i32) -> (i32, i32) {
    %c0_i32 = arith.constant 0 : i32
    %c0_i32_0 = arith.constant 0 : i32
    %c0_i32_1 = arith.constant 0 : i32
    return %c0_i32, %c0_i32_0 : i32, i32
  }
  func.func @transform_3(%arg0: i32) -> (i32, i32) {
    %c0_i32 = arith.constant 0 : i32
    %c0_i32_0 = arith.constant 0 : i32
    %c0_i32_1 = arith.constant 0 : i32
    return %c0_i32, %c0_i32_0 : i32, i32
  }
  func.func @transform_4(%arg0: i32) -> (i32, i32) {
    %c0_i32 = arith.constant 0 : i32
    %c0_i32_0 = arith.constant 0 : i32
    return %arg0, %c0_i32 : i32, i32
  }
  func.func @transform_5(%arg0: i32) -> (i32, i32) {
    %c0_i32 = arith.constant 0 : i32
    %c0_i32_0 = arith.constant 0 : i32
    return %arg0, %c0_i32 : i32, i32
  }
}

</mosaic_0001>

<bundles_post_ra>
// kernel: tpu_custom_call.1
= control target key start
LH: loop header
LB: loop body
LE: loop exit
PB: predicated region body
PF: predicated region fallthrough
CT: control target
= control target key end

     0   :  { %11 = vsyncpa [#allocation3], 0  ;;  %vm45_vm0 = vcmask 523264   ;;  %v515_v2 = vmov 0.0|0.0   ;;  %vm516_vm2 = vmmov 0   ;;  %v517_v5 = vmov 0.0   ;;  %s715_s0 = inlined_call_operand.vmem [shape: f32[8,64], index: 0, kind: input, shape index: {}]   ;;  %s716_s1 = inlined_call_operand.vmem [shape: f32[128,64], index: 1, kind: input, shape index: {}]   ;;  %s717_s2 = inlined_call_operand.vmem [shape: f32[1,128], index: 2, kind: input, shape index: {}]   ;;  %s718_s3 = inlined_call_operand.vmem [shape: f32[128,128], index: 3, kind: input, shape index: {}]   ;;  %s719_s4 = inlined_call_operand.hbm [shape: f32[8,128], index: 4, kind: output, shape index: {0}]   ;;  %s720_s5 = inlined_call_operand.hbm [shape: f32[8,128], index: 5, kind: output, shape index: {1}]  }
   0x1   :  { %v22_v0 = vld [vmem:[%s716_s1] sm:$0xff]  ;;  %v23_v1 = vld [vmem:[%s716_s1 + $0x8] sm:$0xff]  ;;  %406 = vmatprep.subr.bf16.mxu0 %v515_v2  ;;  %vm559_vm1 = vmpackc.low %vm45_vm0, %vm45_vm0  ;;  %438 = vmatprep.subr.bf16.mxu1 %v515_v2 }
   0x2   :  { %v407_v3 = vpack.c.bf16 %v23_v1, %v22_v0  ;;  %368 = vmatprep.mubr.msk.f32.mxu0 %vm516_vm2, %v517_v5  ;;  %403 = vmatprep.mubr.msk.f32.mxu1 %vm516_vm2, %v517_v5  ;;  %v24_v6 = vld [vmem:[%s716_s1 + $0x10] sm:$0xff]  ;;  %v25_v7 = vld [vmem:[%s716_s1 + $0x18] sm:$0xff]  ;;  %v169_v8 = vld [vmem:[%s718_s3] sm:$0xff] }
   0x3   :  { %v170_v9 = vld [vmem:[%s718_s3 + $0x8] sm:$0xff]  ;;  %v411_v10 = vpack.c.bf16 %v25_v7, %v24_v6  ;;  %v171_v12 = vld [vmem:[%s718_s3 + $0x10] sm:$0xff]  ;;  %v172_v13 = vld [vmem:[%s718_s3 + $0x18] sm:$0xff] }
   0x4   :  { %409 = vmatpush3.bf16.xpose.msk.msra.mxu0 %vm559_vm1, %v407_v3  ;;  %v439_v11 = vpack.c.bf16 %v170_v9, %v169_v8 }
   0x5   :  { %410 = vmatprep.subr.bf16.mxu0 %v515_v2 }
   0x6   :  { %440 = vmatpush3.bf16.xpose.msra.mxu1 %v439_v11 }
   0x7   :  { %441 = vmatprep.subr.bf16.mxu1 %v515_v2 }
   0xc   :  { %413 = vmatpush3.bf16.xpose.msk.msra.mxu0 %vm559_vm1, %v411_v10 }
   0xd   :  { %12 = vsyncpa [#allocation5], 0  ;;  %414 = vmatprep.subr.bf16.mxu0 %v515_v2  ;;  %v26_v14 = vld [vmem:[%s716_s1 + $0x20] sm:$0xff]  ;;  %v27_v15 = vld [vmem:[%s716_s1 + $0x28] sm:$0xff]  ;;  %v442_v16 = vpack.c.bf16 %v172_v13, %v171_v12 }
   0xe   :  { %v415_v17 = vpack.c.bf16 %v27_v15, %v26_v14  ;;  %v173_v18 = vld [vmem:[%s718_s3 + $0x20] sm:$0xff]  ;;  %v174_v19 = vld [vmem:[%s718_s3 + $0x28] sm:$0xff]  ;;  %v28_v20 = vld [vmem:[%s716_s1 + $0x30] sm:$0xff] }
   0xf   :  { %443 = vmatpush3.bf16.xpose.msra.mxu1 %v442_v16  ;;  %v29_v21 = vld [vmem:[%s716_s1 + $0x38] sm:$0xff]  ;;  %v445_v22 = vpack.c.bf16 %v174_v19, %v173_v18  ;;  %v175_v24 = vld [vmem:[%s718_s3 + $0x30] sm:$0xff]  ;;  %v30_v26 = vld [vmem:[%s716_s1 + $0x40] sm:$0xff] }
  0x10   :  { %444 = vmatprep.subr.bf16.mxu1 %v515_v2  ;;  %v419_v23 = vpack.c.bf16 %v29_v21, %v28_v20  ;;  %v176_v25 = vld [vmem:[%s718_s3 + $0x38] sm:$0xff]  ;;  %v31_v27 = vld [vmem:[%s716_s1 + $0x48] sm:$0xff]  ;;  %v177_v30 = vld [vmem:[%s718_s3 + $0x40] sm:$0xff] }
  0x11   :  { %v448_v28 = vpack.c.bf16 %v176_v25, %v175_v24  ;;  %v423_v29 = vpack.c.bf16 %v31_v27, %v30_v26  ;;  %v178_v31 = vld [vmem:[%s718_s3 + $0x48] sm:$0xff]  ;;  %v32_v32 = vld [vmem:[%s716_s1 + $0x50] sm:$0xff]  ;;  %v33_v33 = vld [vmem:[%s716_s1 + $0x58] sm:$0xff] }
  0x12   :  { %v451_v34 = vpack.c.bf16 %v178_v31, %v177_v30  ;;  %v427_v35 = vpack.c.bf16 %v33_v33, %v32_v32  ;;  %v179_v36 = vld [vmem:[%s718_s3 + $0x50] sm:$0xff]  ;;  %v180_v37 = vld [vmem:[%s718_s3 + $0x58] sm:$0xff]  ;;  %v34_v38 = vld [vmem:[%s716_s1 + $0x60] sm:$0xff] }
  0x13   :  { %v35_v39 = vld [vmem:[%s716_s1 + $0x68] sm:$0xff]  ;;  %v454_v40 = vpack.c.bf16 %v180_v37, %v179_v36  ;;  %v181_v42 = vld [vmem:[%s718_s3 + $0x60] sm:$0xff]  ;;  %v36_v44 = vld [vmem:[%s716_s1 + $0x70] sm:$0xff] }
  0x14   :  { %417 = vmatpush3.bf16.xpose.msk.msra.mxu0 %vm559_vm1, %v415_v17  ;;  %v431_v41 = vpack.c.bf16 %v35_v39, %v34_v38  ;;  %v182_v43 = vld [vmem:[%s718_s3 + $0x68] sm:$0xff]  ;;  %v37_v45 = vld [vmem:[%s716_s1 + $0x78] sm:$0xff]  ;;  %v183_v48 = vld [vmem:[%s718_s3 + $0x70] sm:$0xff] }
  0x15   :  { %418 = vmatprep.subr.bf16.mxu0 %v515_v2  ;;  %v457_v46 = vpack.c.bf16 %v182_v43, %v181_v42  ;;  %v435_v47 = vpack.c.bf16 %v37_v45, %v36_v44  ;;  %v184_v49 = vld [vmem:[%s718_s3 + $0x78] sm:$0xff]  ;;  %v21_v51 = vld [vmem:[%s715_s0] sm:$0xff]  ;;  %s518_s3 = smov [#allocation2]  }
  0x16   :  { %v460_v50 = vpack.c.bf16 %v184_v49, %v183_v48  ;;  %v284_v52 = vld [vmem:[%s717_s2] ss:$0 sm:$0xff]  ;;  %s262_s10 = sshll.u32 %s518_s3, 4  ;;  %s263_s10 = int_to_ptr.vmem [resolvable:$true] %s262_s10 }
  0x17   :  { %446 = vmatpush3.bf16.xpose.msra.mxu1 %v445_v22  ;;  %s467_s11 = scalar_lea.vmem %s263_s10, 128  ;;  %p472_p1 = scmp.lt.s32.totalorder %s263_s10, %s263_s10 }
  0x18   :  { %447 = vmatprep.subr.bf16.mxu1 %v515_v2  ;;  %p468_p0 = scmp.ne.s32.totalorder %s263_s10, %s467_s11  ;;  %p473_p2 = scmp.lt.s32.totalorder %s467_s11, %s467_s11 }
  0x1a   :  { %p474_p3 = por %p473_p2, %p472_p1 }
  0x1c   :  { %421 = vmatpush3.bf16.xpose.msk.msra.mxu0 %vm559_vm1, %v419_v23  ;;  %p475_p4 = pnand %p474_p3, %p468_p0 }
  0x1d   :  { %422 = vmatprep.subr.bf16.mxu0 %v515_v2 }
  0x1f   :  { %449 = vmatpush3.bf16.xpose.msra.mxu1 %v448_v28 }
  0x20   :  { %450 = vmatprep.subr.bf16.mxu1 %v515_v2 }
  0x24   :  { %425 = vmatpush3.bf16.xpose.msk.msra.mxu0 %vm559_vm1, %v423_v29 }
  0x25   :  { %426 = vmatprep.subr.bf16.mxu0 %v515_v2 }
  0x27   :  { %452 = vmatpush3.bf16.xpose.msra.mxu1 %v451_v34 }
  0x28   :  { %453 = vmatprep.subr.bf16.mxu1 %v515_v2 }
  0x2c   :  { %429 = vmatpush3.bf16.xpose.msk.msra.mxu0 %vm559_vm1, %v427_v35 }
  0x2d   :  { %430 = vmatprep.subr.bf16.mxu0 %v515_v2 }
  0x2f   :  { %455 = vmatpush3.bf16.xpose.msra.mxu1 %v454_v40 }
  0x30   :  { %456 = vmatprep.subr.bf16.mxu1 %v515_v2 }
  0x34   :  { %433 = vmatpush3.bf16.xpose.msk.msra.mxu0 %vm559_vm1, %v431_v41 }
  0x35   :  { %434 = vmatprep.subr.bf16.mxu0 %v515_v2 }
  0x37   :  { %458 = vmatpush3.bf16.xpose.msra.mxu1 %v457_v46 }
  0x38   :  { %459 = vmatprep.subr.bf16.mxu1 %v515_v2 }
  0x3c   :  { %437 = vmatpush3.bf16.xpose.msk.msra.mxu0 %vm559_vm1, %v435_v47 }
  0x3f   :  { %461 = vmatpush3.bf16.xpose.msra.mxu1 %v460_v50 }
  0x43   :  { %369 = vmatmul.mubr.msk.f32.vlgmr.msra.gmra.mrb[0].mxu0 %vm45_vm0, %v21_v51 }
 0x116   :  { %v163_v53 = vpop.f32.mrb[0].mxu0 }
 0x117   :  { %v164_v54 = vadd.f32 %v284_v52, %v163_v53  ;;  %v370_v55 = vpop.f32.mrb[1].mxu0 }
 0x119   :  { %v167_v56 = vmax.f32 %v164_v54, 0.0 }
 0x11b   :  { %168 = vst [vmem:[#allocation2] sm:$0xff] %v167_v56  ;;  %404 = vmatmul.mubr.f32.vlgmr.msra.gmra.mrb[0].mxu1 %v167_v56 }
 0x11c   :  { %478 = shalt.err (!%p475_p4)
}
 0x11d   :  { %s479_s2 = scalar_lea.hbm %s719_s4, 128 }
 0x11e   :  { %p480_p5 = scmp.ne.s32.totalorder %s719_s4, %s479_s2  ;;  %p483_p6 = scmp.lt.u32.totalorder %s479_s2, %s719_s4 }
 0x120   :  { %p485_p7 = pnand %p483_p6, %p480_p5 }
 0x122   :  { %488 = shalt.err (!%p485_p7)
}
 0x123   :  { %265 = dma.vmem_to_hbm [thread:$0]  %s263_s10, 128, %s719_s4, [#allocation3]  }
 0x124   :  { %s519_s19 = smov [#allocation4]  }
 0x125   :  { %s272_s20 = sshll.u32 %s519_s19, 4  ;;  %s273_s20 = int_to_ptr.vmem [resolvable:$true] %s272_s20 }
 0x126   :  { %s489_s21 = scalar_lea.vmem %s273_s20, 128  ;;  %p494_p9 = scmp.lt.s32.totalorder %s273_s20, %s273_s20 }
 0x127   :  { %p490_p8 = scmp.ne.s32.totalorder %s273_s20, %s489_s21  ;;  %p495_p10 = scmp.lt.s32.totalorder %s489_s21, %s489_s21 }
 0x129   :  { %p496_p11 = por %p495_p10, %p494_p9 }
 0x12b   :  { %p497_p12 = pnand %p496_p11, %p490_p8 }
 0x1ee   :  { %v251_v57 = vpop.f32.mrb[0].mxu1 }
 0x1ef   :  { %255 = vst [vmem:[#allocation4] sm:$0xff] %v251_v57  ;;  %v405_v58 = vpop.f32.mrb[1].mxu1 }
 0x1f0   :  { %500 = shalt.err (!%p497_p12)
}
 0x1f1   :  { %s501_s24 = scalar_lea.hbm %s720_s5, 128 }
 0x1f2   :  { %p502_p13 = scmp.ne.s32.totalorder %s720_s5, %s501_s24  ;;  %p505_p0 = scmp.lt.u32.totalorder %s501_s24, %s720_s5 }
 0x1f4   :  { %p507_p1 = pnand %p505_p0, %p502_p13 }
 0x1f6   :  { %510 = shalt.err (!%p507_p1)
}
 0x1f7   :  { %275 = dma.vmem_to_hbm [thread:$0]  %s273_s20, 128, %s720_s5, [#allocation5]  }
 0x1f8   :  { %511 = dma.done.wait [#allocation3], 128  }
 0x1f9   :  { %512 = vsyncadd [#allocation3], 4294967168 }
 0x1fa   :  { %513 = dma.done.wait [#allocation5], 128  }
 0x1fb   :  { %514 = vsyncadd [#allocation5], 4294967168 }
 0x1fc   :  { %282 = vsyncpa [#allocation3], 1 }
 0x1fd   :  { %283 = vsyncpa [#allocation5], 1 }

</bundles_post_ra>
